<compile_context>
chip_gen: v6e
topology: v6e:2x2x1
jax: 0.10.0
libtpu: 0.0.40
codegen_flags: <defaults>
</compile_context>

<pallas_src>
import functools

import jax
import jax.numpy as jnp
from jax.experimental import pallas as pl
from jax.experimental.pallas import tpu as pltpu


def _round_up(x, m):
    return ((x + m - 1) // m) * m


def _choose_seq_tile(S, D, k, act_itemsize, seq_tile):
    """VMEM-budget-driven sequence tile (multiple of 8, >= k-1)."""
    if seq_tile is None:
        # Aim for ~1 MiB activation tiles so per-grid-step overhead (~0.35 us)
        # and tiny DMAs don't dominate for small D; clamp to [128, 4096] rows.
        target_bytes = 1 << 20
        seq_tile = max(128, min(4096, target_bytes // max(1, D * act_itemsize)))
    ts = min(int(seq_tile), _round_up(S, 8))
    ts = max(ts, k - 1, 8)
    return _round_up(ts, 8)


def _vmem_limit_bytes():
    """~3/4 of physical VMEM (96 MiB on v5e/v6e, 48 MiB on v7x); safe fallback."""
    try:
        info = pltpu.get_tpu_info()
        cap = int(getattr(info, "vmem_capacity_bytes", 0) or 0)
        if cap > 0:
            return int(min(100 * 1024 * 1024, (cap * 3) // 4))
    except Exception:
        pass
    return 48 * 1024 * 1024


def _im2col_causal(x_mm, halo_ref, si, k, ts):
    """Build the (TS, k*D) im2col of the k causal taps for the current tile.

    halo_ref carries the previous tile's last (k-1) rows; zeroing it at si == 0
    reproduces the causal zero left-pad exactly.
    """
    if k == 1:
        return x_mm

    @pl.when(si == 0)
    def _():
        halo_ref[...] = jnp.zeros_like(halo_ref)

    ext = jnp.concatenate([halo_ref[...], x_mm], axis=0)          # (TS+k-1, D)
    return jnp.concatenate([ext[t:t + ts, :] for t in range(k)], axis=1)


def _update_halo(halo_ref, x_mm, k, ts):
    if k > 1:
        # Carry this tile's last (k-1) rows for the next S-tile of this batch.
        halo_ref[...] = x_mm[ts - (k - 1):ts, :]


def _make_kernel_fused(k, ts, d, mm_dtype):
    """D % 128 == 0: one (k*D, 2D) weight, single MXU contraction,
    lane-aligned GLU slice of the f32 accumulator at column D."""

    def kernel(x_ref, w_ref, b_ref, o_ref, halo_ref):
        si = pl.program_id(1)
        x_cur = x_ref[0]                                  # (TS, D) activation dtype
        x_mm = x_cur.astype(mm_dtype)                     # bf16 MXU operand

        xk = _im2col_causal(x_mm, halo_ref, si, k, ts)    # (TS, k*D)
        acc = jnp.dot(xk, w_ref[...], preferred_element_type=jnp.float32)
        acc = acc + b_ref[...].astype(jnp.float32)        # (TS, 2D) f32
        a, g = acc[:, :d], acc[:, d:]                     # lane-aligned slices
        glu = a * jax.nn.sigmoid(g)
        # dropout == identity (eval mode); residual add in f32; cast back.
        o_ref[0] = (glu + x_cur.astype(jnp.float32)).astype(o_ref.dtype)

        _update_halo(halo_ref, x_mm, k, ts)

    return kernel


def _make_kernel_split(k, ts, d, mm_dtype):
    """D % 128 != 0: keep the GLU halves as separate weights so the
    accumulators, sigmoid input and output store never slice at a non-lane
    boundary."""

    def kernel(x_ref, wa_ref, wg_ref, ba_ref, bg_ref, o_ref, halo_ref):
        si = pl.program_id(1)
        x_cur = x_ref[0]
        x_mm = x_cur.astype(mm_dtype)

        xk = _im2col_causal(x_mm, halo_ref, si, k, ts)
        acc_a = jnp.dot(xk, wa_ref[...], preferred_element_type=jnp.float32)
        acc_g = jnp.dot(xk, wg_ref[...], preferred_element_type=jnp.float32)
        acc_a = acc_a + ba_ref[...].astype(jnp.float32)
        acc_g = acc_g + bg_ref[...].astype(jnp.float32)
        glu = acc_a * jax.nn.sigmoid(acc_g)
        o_ref[0] = (glu + x_cur.astype(jnp.float32)).astype(o_ref.dtype)

        _update_halo(halo_ref, x_mm, k, ts)

    return kernel


@functools.partial(jax.jit, static_argnames=("kernel_size", "seq_tile",
                                              "matmul_dtype", "weight_buffers"))
def _causal_conv_block(x, w, b, *, kernel_size, seq_tile, matmul_dtype,
                       weight_buffers):
    """x: (B, S, D); w: (k, D, 2D) with w[t, i, o] == torch_w[o, i, t]; b: (2D,)."""
    B, S, D = x.shape
    k = kernel_size
    assert w.shape == (k, D, 2 * D), w.shape
    assert b.shape == (2 * D,), b.shape

    act_itemsize = jnp.dtype(x.dtype).itemsize
    ts = _choose_seq_tile(S, D, k, act_itemsize, seq_tile)
    assert k - 1 <= ts, (k, ts)
    num_s = pl.cdiv(S, ts)                 # ragged last tile handled by clipping
    fused = (D % 128 == 0)
    mm_dtype = jnp.dtype(matmul_dtype)

    if fused:
        # One (k*D, 2D) weight: W[t*D + i, o] == w[t, i, o]; one N=2D matmul.
        w_ops = (w.reshape(k * D, 2 * D).astype(mm_dtype),
                 b.reshape(1, 2 * D))
        w_shapes = ((k * D, 2 * D), (1, 2 * D))
        kernel = _make_kernel_fused(k, ts, D, mm_dtype)
    else:
        # GLU halves split so slices stay lane-clean for D < 128.
        w_ops = (w[:, :, :D].reshape(k * D, D).astype(mm_dtype),
                 w[:, :, D:].reshape(k * D, D).astype(mm_dtype),
                 b[:D].reshape(1, D),
                 b[D:].reshape(1, D))
        w_shapes = ((k * D, D), (k * D, D), (1, D), (1, D))
        kernel = _make_kernel_split(k, ts, D, mm_dtype)

    # Weights/bias never change across the grid (constant index_map); when
    # supported, allocate only a single VMEM buffer for them.
    spec_kwargs = {}
    if weight_buffers == 1:
        spec_kwargs = dict(pipeline_mode=pl.Buffered(1))
    weight_specs = [pl.BlockSpec(s, lambda bi, si: (0, 0), **spec_kwargs)
                    for s in w_shapes]

    w_itemsize = jnp.dtype(mm_dtype).itemsize
    cost = pl.CostEstimate(
        flops=int(2 * B * S * (k * D) * (2 * D) + 6 * B * S * D),
        transcendentals=int(2 * B * S * D),        # sigmoid ~= exp + reciprocal
        bytes_accessed=int(2 * B * S * D * act_itemsize
                           + 2 * k * D * D * w_itemsize
                           + 2 * D * 4),
    )

    return pl.pallas_call(
        kernel,
        out_shape=jax.ShapeDtypeStruct((B, S, D), x.dtype),
        grid_spec=pltpu.PrefetchScalarGridSpec(
            num_scalar_prefetch=0,
            grid=(B, num_s),
            in_specs=[pl.BlockSpec((1, ts, D), lambda bi, si: (bi, si, 0))]
                     + weight_specs,
            out_specs=pl.BlockSpec((1, ts, D), lambda bi, si: (bi, si, 0)),
            scratch_shapes=[pltpu.VMEM((max(k - 1, 1), D), mm_dtype)],
        ),
        compiler_params=pltpu.CompilerParams(
            # Batch tiles are independent (megacore-shardable); the S axis
            # carries the causal halo, hence "arbitrary" (must stay innermost
            # and never be split across cores -- see module docstring).
            dimension_semantics=("parallel", "arbitrary"),
            vmem_limit_bytes=_vmem_limit_bytes(),
        ),
        cost_estimate=cost,
    )(x, *w_ops)


def causal_conv_block(x, w, b, *, kernel_size, seq_tile=None,
                      matmul_dtype=jnp.bfloat16):
    """CausalConvBlock forward (dropout = identity).  Tries single-buffered
    weights first; falls back to default double-buffering if the installed
    jax does not accept pipeline_mode=pl.Buffered(1)."""
    try:
        return _causal_conv_block(x, w, b, kernel_size=kernel_size,
                                  seq_tile=seq_tile, matmul_dtype=matmul_dtype,
                                  weight_buffers=1)
    except Exception:
        return _causal_conv_block(x, w, b, kernel_size=kernel_size,
                                  seq_tile=seq_tile, matmul_dtype=matmul_dtype,
                                  weight_buffers=2)


def _reference(x, w, b, kernel_size):
    """Pure-JAX f32 reference matching the PyTorch module (dropout = identity)."""
    B, S, D = x.shape
    k = kernel_size
    xf = x.astype(jnp.float32)
    x_pad = jnp.pad(xf, ((0, 0), (k - 1, 0), (0, 0)))
    conv = jnp.zeros((B, S, 2 * D), jnp.float32)
    for t in range(k):
        conv = conv + jnp.einsum("bsd,do->bso", x_pad[:, t:t + S, :],
                                 w[t].astype(jnp.float32),
                                 precision=jax.lax.Precision.HIGHEST)
    conv = conv + b.astype(jnp.float32)
    a, g = conv[..., :D], conv[..., D:]
    return a * jax.nn.sigmoid(g) + xf


if __name__ == "__main__":
    root = jax.random.PRNGKey(0)

    def run_case(name, B, S, D, K, *, seq_tile=None, matmul_dtype=jnp.bfloat16,
                 act_dtype=jnp.float32, atol=5e-2, key=root):
        kx, kw, kb = jax.random.split(key, 3)
        x = jax.random.normal(kx, (B, S, D), dtype=jnp.float32).astype(act_dtype)
        # Conv1d(D -> 2D, kernel_size=K) weights in (K, D, 2D) layout,
        # w[t, i, o] == torch_w[o, i, t].
        w = jax.random.normal(kw, (K, D, 2 * D), dtype=jnp.float32) * 0.1
        b = jax.random.normal(kb, (2 * D,), dtype=jnp.float32) * 0.1

        out = causal_conv_block(x, w, b, kernel_size=K, seq_tile=seq_tile,
                                matmul_dtype=matmul_dtype)
        out = jax.block_until_ready(out)
        assert out.shape == (B, S, D) and out.dtype == x.dtype, name
        ref = _reference(x, w, b, K)
        err = float(jnp.max(jnp.abs(out.astype(jnp.float32) - ref)))
        assert err < atol, f"{name}: max|err| = {err}"

    # Module-consistent small config: batch=2, seq=8, dim=32, kernel_size=3
    # (single tile, split GLU path, f32 matmul).
    run_case("small_f32", 2, 8, 32, 3, matmul_dtype=jnp.float32, atol=1e-2,
             key=jax.random.fold_in(root, 0))
    # Multi-tile halo carry + fused (D % 128 == 0) single-matmul GLU, bf16 MXU.
    run_case("fused_d128", 2, 64, 128, 3, seq_tile=16, atol=5e-2,
             key=jax.random.fold_in(root, 1))
    # Ragged last sequence tile (S=24, TS=16) + split GLU path + k=4 halo.
    run_case("ragged_k4", 2, 24, 32, 4, seq_tile=16, atol=5e-2,
             key=jax.random.fold_in(root, 2))
    # bf16 activations: halves x/out HBM traffic; output stays bf16.
    run_case("bf16_act", 2, 32, 32, 3, seq_tile=16, act_dtype=jnp.bfloat16,
             atol=1e-1, key=jax.random.fold_in(root, 3))

    print("KERNEL_OK")
</pallas_src>

<mosaic_0001>
module attributes {stable_mosaic.version = 11 : i64} {
  func.func @kernel(%arg0: i32, %arg1: i32, %arg2: memref<1x8x32xf32, #tpu.memory_space<vmem>>, %arg3: memref<96x32xf32, #tpu.memory_space<vmem>>, %arg4: memref<96x32xf32, #tpu.memory_space<vmem>>, %arg5: memref<1x32xf32, #tpu.memory_space<vmem>>, %arg6: memref<1x32xf32, #tpu.memory_space<vmem>>, %arg7: memref<1x8x32xf32, #tpu.memory_space<vmem>>, %arg8: memref<2x32xf32, #tpu.memory_space<vmem>>) attributes {dimension_semantics = [#tpu.dimension_semantics<parallel>, #tpu.dimension_semantics<arbitrary>], iteration_bounds = array<i64: 2, 1>, scalar_prefetch = 0 : i64, scratch_operands = 1 : i64, tpu.core_type = #tpu.core_type<tc>, window_params = [{transform_indices = @transform_0, window_bounds = array<i64: 1, 8, 32>}, {pipeline_mode = #tpu.pipeline_mode<synchronous>, transform_indices = @transform_1, window_bounds = array<i64: 96, 32>}, {pipeline_mode = #tpu.pipeline_mode<synchronous>, transform_indices = @transform_2, window_bounds = array<i64: 96, 32>}, {pipeline_mode = #tpu.pipeline_mode<synchronous>, transform_indices = @transform_3, window_bounds = array<i64: 1, 32>}, {pipeline_mode = #tpu.pipeline_mode<synchronous>, transform_indices = @transform_4, window_bounds = array<i64: 1, 32>}, {transform_indices = @transform_5, window_bounds = array<i64: 1, 8, 32>}]} {
    %c0 = arith.constant 0 : index
    %c0_0 = arith.constant 0 : index
    %c0_1 = arith.constant 0 : index
    %0 = vector.load %arg2[%c0, %c0_0, %c0_1] : memref<1x8x32xf32, #tpu.memory_space<vmem>>, vector<1x8x32xf32>
    %1 = vector.shape_cast %0 : vector<1x8x32xf32> to vector<8x32xf32>
    %c0_i32 = arith.constant 0 : i32
    %2 = arith.cmpi eq, %arg1, %c0_i32 : i32
    %3 = arith.extui %2 : i1 to i32
    %c0_i32_2 = arith.constant 0 : i32
    %4 = arith.cmpi ne, %3, %c0_i32_2 : i32
    scf.if %4 {
      %cst_20 = arith.constant 0.000000e+00 : f32
      %33 = vector.broadcast %cst_20 : f32 to vector<2x32xf32>
      %c0_21 = arith.constant 0 : index
      %c0_22 = arith.constant 0 : index
      %34 = vector.load %arg8[%c0_21, %c0_22] : memref<2x32xf32, #tpu.memory_space<vmem>>, vector<2x32xf32>
      tpu.vector_store %arg8[%c0_21, %c0_22], %33 {strides = array<i32>} : memref<2x32xf32, #tpu.memory_space<vmem>>, vector<2x32xf32>,
    } else {
    }
    %c0_3 = arith.constant 0 : index
    %c0_4 = arith.constant 0 : index
    %5 = vector.load %arg8[%c0_3, %c0_4] : memref<2x32xf32, #tpu.memory_space<vmem>>, vector<2x32xf32>
    %6 = tpu.concatenate %5, %1 in 0 : vector<2x32xf32>, vector<8x32xf32> -> vector<10x32xf32>
    %7 = vector.extract_strided_slice %6 {offsets = [0, 0], sizes = [8, 32], strides = [1, 1]} : vector<10x32xf32> to vector<8x32xf32>
    %8 = vector.extract_strided_slice %6 {offsets = [1, 0], sizes = [8, 32], strides = [1, 1]} : vector<10x32xf32> to vector<8x32xf32>
    %9 = vector.extract_strided_slice %6 {offsets = [2, 0], sizes = [8, 32], strides = [1, 1]} : vector<10x32xf32> to vector<8x32xf32>
    %10 = tpu.concatenate %7, %8, %9 in 1 : vector<8x32xf32>, vector<8x32xf32>, vector<8x32xf32> -> vector<8x96xf32>
    %c0_5 = arith.constant 0 : index
    %c0_6 = arith.constant 0 : index
    %11 = vector.load %arg3[%c0_5, %c0_6] : memref<96x32xf32, #tpu.memory_space<vmem>>, vector<96x32xf32>
    %cst = arith.constant dense<0.000000e+00> : vector<8x32xf32>
    %12 = tpu.matmul %10, %11, %cst {dimension_numbers = #tpu.dot_dimension_numbers<[1], [0], [0], [1], [0, 0, 1, 1], [], []>} : vector<8x96xf32>, vector<96x32xf32>, vector<8x32xf32> -> vector<8x32xf32>
    %c0_7 = arith.constant 0 : index
    %c0_8 = arith.constant 0 : index
    %13 = vector.load %arg4[%c0_7, %c0_8] : memref<96x32xf32, #tpu.memory_space<vmem>>, vector<96x32xf32>
    %cst_9 = arith.constant dense<0.000000e+00> : vector<8x32xf32>
    %14 = tpu.matmul %10, %13, %cst_9 {dimension_numbers = #tpu.dot_dimension_numbers<[1], [0], [0], [1], [0, 0, 1, 1], [], []>} : vector<8x96xf32>, vector<96x32xf32>, vector<8x32xf32> -> vector<8x32xf32>
    %c0_10 = arith.constant 0 : index
    %c0_11 = arith.constant 0 : index
    %15 = vector.load %arg5[%c0_10, %c0_11] : memref<1x32xf32, #tpu.memory_space<vmem>>, vector<1x32xf32>
    %16 = vector.broadcast %15 : vector<1x32xf32> to vector<8x32xf32>
    %17 = arith.addf %12, %16 : vector<8x32xf32>
    %c0_12 = arith.constant 0 : index
    %c0_13 = arith.constant 0 : index
    %18 = vector.load %arg6[%c0_12, %c0_13] : memref<1x32xf32, #tpu.memory_space<vmem>>, vector<1x32xf32>
    %19 = vector.broadcast %18 : vector<1x32xf32> to vector<8x32xf32>
    %20 = arith.addf %14, %19 : vector<8x32xf32>
    %21 = arith.negf %20 : vector<8x32xf32>
    %22 = math.exp %21 : vector<8x32xf32>
    %cst_14 = arith.constant 1.000000e+00 : f32
    %23 = vector.broadcast %cst_14 : f32 to vector<8x32xf32>
    %24 = arith.addf %23, %22 : vector<8x32xf32>
    %25 = arith.divf %23, %24 : vector<8x32xf32>
    %26 = arith.mulf %17, %25 : vector<8x32xf32>
    %27 = arith.addf %26, %1 : vector<8x32xf32>
    %c0_15 = arith.constant 0 : index
    %c0_16 = arith.constant 0 : index
    %c0_17 = arith.constant 0 : index
    %28 = vector.load %arg7[%c0_15, %c0_16, %c0_17] : memref<1x8x32xf32, #tpu.memory_space<vmem>>, vector<1x8x32xf32>
    %29 = vector.shape_cast %28 : vector<1x8x32xf32> to vector<8x32xf32>
    %30 = vector.shape_cast %27 : vector<8x32xf32> to vector<1x8x32xf32>
    tpu.vector_store %arg7[%c0_15, %c0_16, %c0_17], %30 {strides = array<i32>} : memref<1x8x32xf32, #tpu.memory_space<vmem>>, vector<1x8x32xf32>,
    %31 = vector.extract_strided_slice %1 {offsets = [6, 0], sizes = [2, 32], strides = [1, 1]} : vector<8x32xf32> to vector<2x32xf32>
    %c0_18 = arith.constant 0 : index
    %c0_19 = arith.constant 0 : index
    %32 = vector.load %arg8[%c0_18, %c0_19] : memref<2x32xf32, #tpu.memory_space<vmem>>, vector<2x32xf32>
    tpu.vector_store %arg8[%c0_18, %c0_19], %31 {strides = array<i32>} : memref<2x32xf32, #tpu.memory_space<vmem>>, vector<2x32xf32>,
    return
  }
  func.func @transform_0(%arg0: i32, %arg1: i32) -> (i32, i32, i32) {
    %c0_i32 = arith.constant 0 : i32
    %c0_i32_0 = arith.constant 0 : i32
    return %arg0, %arg1, %c0_i32 : i32, i32, i32
  }
  func.func @transform_1(%arg0: i32, %arg1: i32) -> (i32, i32) {
    %c0_i32 = arith.constant 0 : i32
    %c0_i32_0 = arith.constant 0 : i32
    %c0_i32_1 = arith.constant 0 : i32
    return %c0_i32, %c0_i32_0 : i32, i32
  }
  func.func @transform_2(%arg0: i32, %arg1: i32) -> (i32, i32) {
    %c0_i32 = arith.constant 0 : i32
    %c0_i32_0 = arith.constant 0 : i32
    %c0_i32_1 = arith.constant 0 : i32
    return %c0_i32, %c0_i32_0 : i32, i32
  }
  func.func @transform_3(%arg0: i32, %arg1: i32) -> (i32, i32) {
    %c0_i32 = arith.constant 0 : i32
    %c0_i32_0 = arith.constant 0 : i32
    %c0_i32_1 = arith.constant 0 : i32
    return %c0_i32, %c0_i32_0 : i32, i32
  }
  func.func @transform_4(%arg0: i32, %arg1: i32) -> (i32, i32) {
    %c0_i32 = arith.constant 0 : i32
    %c0_i32_0 = arith.constant 0 : i32
    %c0_i32_1 = arith.constant 0 : i32
    return %c0_i32, %c0_i32_0 : i32, i32
  }
  func.func @transform_5(%arg0: i32, %arg1: i32) -> (i32, i32, i32) {
    %c0_i32 = arith.constant 0 : i32
    %c0_i32_0 = arith.constant 0 : i32
    return %arg0, %arg1, %c0_i32 : i32, i32, i32
  }
}

module attributes {stable_mosaic.version = 11 : i64} {
  func.func @kernel(%arg0: i32, %arg1: i32, %arg2: memref<1x8x32xf32, #tpu.memory_space<vmem>>, %arg3: memref<96x32xf32, #tpu.memory_space<vmem>>, %arg4: memref<96x32xf32, #tpu.memory_space<vmem>>, %arg5: memref<1x32xf32, #tpu.memory_space<vmem>>, %arg6: memref<1x32xf32, #tpu.memory_space<vmem>>, %arg7: memref<1x8x32xf32, #tpu.memory_space<vmem>>, %arg8: memref<2x32xf32, #tpu.memory_space<vmem>>) attributes {dimension_semantics = [#tpu.dimension_semantics<parallel>, #tpu.dimension_semantics<arbitrary>], iteration_bounds = array<i64: 2, 1>, scalar_prefetch = 0 : i64, scratch_operands = 1 : i64, tpu.core_type = #tpu.core_type<tc>, window_params = [{transform_indices = @transform_0, window_bounds = array<i64: 1, 8, 32>}, {pipeline_mode = #tpu.pipeline_mode<synchronous>, transform_indices = @transform_1, window_bounds = array<i64: 96, 32>}, {pipeline_mode = #tpu.pipeline_mode<synchronous>, transform_indices = @transform_2, window_bounds = array<i64: 96, 32>}, {pipeline_mode = #tpu.pipeline_mode<synchronous>, transform_indices = @transform_3, window_bounds = array<i64: 1, 32>}, {pipeline_mode = #tpu.pipeline_mode<synchronous>, transform_indices = @transform_4, window_bounds = array<i64: 1, 32>}, {transform_indices = @transform_5, window_bounds = array<i64: 1, 8, 32>}]} {
    %c0 = arith.constant 0 : index
    %c0_0 = arith.constant 0 : index
    %c0_1 = arith.constant 0 : index
    %0 = vector.load %arg2[%c0, %c0_0, %c0_1] : memref<1x8x32xf32, #tpu.memory_space<vmem>>, vector<1x8x32xf32>
    %1 = vector.shape_cast %0 : vector<1x8x32xf32> to vector<8x32xf32>
    %c0_i32 = arith.constant 0 : i32
    %2 = arith.cmpi eq, %arg1, %c0_i32 : i32
    %3 = arith.extui %2 : i1 to i32
    %c0_i32_2 = arith.constant 0 : i32
    %4 = arith.cmpi ne, %3, %c0_i32_2 : i32
    scf.if %4 {
      %cst_20 = arith.constant 0.000000e+00 : f32
      %33 = vector.broadcast %cst_20 : f32 to vector<2x32xf32>
      %c0_21 = arith.constant 0 : index
      %c0_22 = arith.constant 0 : index
      %34 = vector.load %arg8[%c0_21, %c0_22] : memref<2x32xf32, #tpu.memory_space<vmem>>, vector<2x32xf32>
      tpu.vector_store %arg8[%c0_21, %c0_22], %33 {strides = array<i32>} : memref<2x32xf32, #tpu.memory_space<vmem>>, vector<2x32xf32>,
    } else {
    }
    %c0_3 = arith.constant 0 : index
    %c0_4 = arith.constant 0 : index
    %5 = vector.load %arg8[%c0_3, %c0_4] : memref<2x32xf32, #tpu.memory_space<vmem>>, vector<2x32xf32>
    %6 = tpu.concatenate %5, %1 in 0 : vector<2x32xf32>, vector<8x32xf32> -> vector<10x32xf32>
    %7 = vector.extract_strided_slice %6 {offsets = [0, 0], sizes = [8, 32], strides = [1, 1]} : vector<10x32xf32> to vector<8x32xf32>
    %8 = vector.extract_strided_slice %6 {offsets = [1, 0], sizes = [8, 32], strides = [1, 1]} : vector<10x32xf32> to vector<8x32xf32>
    %9 = vector.extract_strided_slice %6 {offsets = [2, 0], sizes = [8, 32], strides = [1, 1]} : vector<10x32xf32> to vector<8x32xf32>
    %10 = tpu.concatenate %7, %8, %9 in 1 : vector<8x32xf32>, vector<8x32xf32>, vector<8x32xf32> -> vector<8x96xf32>
    %c0_5 = arith.constant 0 : index
    %c0_6 = arith.constant 0 : index
    %11 = vector.load %arg3[%c0_5, %c0_6] : memref<96x32xf32, #tpu.memory_space<vmem>>, vector<96x32xf32>
    %cst = arith.constant dense<0.000000e+00> : vector<8x32xf32>
    %12 = tpu.matmul %10, %11, %cst {dimension_numbers = #tpu.dot_dimension_numbers<[1], [0], [0], [1], [0, 0, 1, 1], [], []>} : vector<8x96xf32>, vector<96x32xf32>, vector<8x32xf32> -> vector<8x32xf32>
    %c0_7 = arith.constant 0 : index
    %c0_8 = arith.constant 0 : index
    %13 = vector.load %arg4[%c0_7, %c0_8] : memref<96x32xf32, #tpu.memory_space<vmem>>, vector<96x32xf32>
    %cst_9 = arith.constant dense<0.000000e+00> : vector<8x32xf32>
    %14 = tpu.matmul %10, %13, %cst_9 {dimension_numbers = #tpu.dot_dimension_numbers<[1], [0], [0], [1], [0, 0, 1, 1], [], []>} : vector<8x96xf32>, vector<96x32xf32>, vector<8x32xf32> -> vector<8x32xf32>
    %c0_10 = arith.constant 0 : index
    %c0_11 = arith.constant 0 : index
    %15 = vector.load %arg5[%c0_10, %c0_11] : memref<1x32xf32, #tpu.memory_space<vmem>>, vector<1x32xf32>
    %16 = vector.broadcast %15 : vector<1x32xf32> to vector<8x32xf32>
    %17 = arith.addf %12, %16 : vector<8x32xf32>
    %c0_12 = arith.constant 0 : index
    %c0_13 = arith.constant 0 : index
    %18 = vector.load %arg6[%c0_12, %c0_13] : memref<1x32xf32, #tpu.memory_space<vmem>>, vector<1x32xf32>
    %19 = vector.broadcast %18 : vector<1x32xf32> to vector<8x32xf32>
    %20 = arith.addf %14, %19 : vector<8x32xf32>
    %21 = arith.negf %20 : vector<8x32xf32>
    %22 = math.exp %21 : vector<8x32xf32>
    %cst_14 = arith.constant 1.000000e+00 : f32
    %23 = vector.broadcast %cst_14 : f32 to vector<8x32xf32>
    %24 = arith.addf %23, %22 : vector<8x32xf32>
    %25 = arith.divf %23, %24 : vector<8x32xf32>
    %26 = arith.mulf %17, %25 : vector<8x32xf32>
    %27 = arith.addf %26, %1 : vector<8x32xf32>
    %c0_15 = arith.constant 0 : index
    %c0_16 = arith.constant 0 : index
    %c0_17 = arith.constant 0 : index
    %28 = vector.load %arg7[%c0_15, %c0_16, %c0_17] : memref<1x8x32xf32, #tpu.memory_space<vmem>>, vector<1x8x32xf32>
    %29 = vector.shape_cast %28 : vector<1x8x32xf32> to vector<8x32xf32>
    %30 = vector.shape_cast %27 : vector<8x32xf32> to vector<1x8x32xf32>
    tpu.vector_store %arg7[%c0_15, %c0_16, %c0_17], %30 {strides = array<i32>} : memref<1x8x32xf32, #tpu.memory_space<vmem>>, vector<1x8x32xf32>,
    %31 = vector.extract_strided_slice %1 {offsets = [6, 0], sizes = [2, 32], strides = [1, 1]} : vector<8x32xf32> to vector<2x32xf32>
    %c0_18 = arith.constant 0 : index
    %c0_19 = arith.constant 0 : index
    %32 = vector.load %arg8[%c0_18, %c0_19] : memref<2x32xf32, #tpu.memory_space<vmem>>, vector<2x32xf32>
    tpu.vector_store %arg8[%c0_18, %c0_19], %31 {strides = array<i32>} : memref<2x32xf32, #tpu.memory_space<vmem>>, vector<2x32xf32>,
    return
  }
  func.func @transform_0(%arg0: i32, %arg1: i32) -> (i32, i32, i32) {
    %c0_i32 = arith.constant 0 : i32
    %c0_i32_0 = arith.constant 0 : i32
    return %arg0, %arg1, %c0_i32 : i32, i32, i32
  }
  func.func @transform_1(%arg0: i32, %arg1: i32) -> (i32, i32) {
    %c0_i32 = arith.constant 0 : i32
    %c0_i32_0 = arith.constant 0 : i32
    %c0_i32_1 = arith.constant 0 : i32
    return %c0_i32, %c0_i32_0 : i32, i32
  }
  func.func @transform_2(%arg0: i32, %arg1: i32) -> (i32, i32) {
    %c0_i32 = arith.constant 0 : i32
    %c0_i32_0 = arith.constant 0 : i32
    %c0_i32_1 = arith.constant 0 : i32
    return %c0_i32, %c0_i32_0 : i32, i32
  }
  func.func @transform_3(%arg0: i32, %arg1: i32) -> (i32, i32) {
    %c0_i32 = arith.constant 0 : i32
    %c0_i32_0 = arith.constant 0 : i32
    %c0_i32_1 = arith.constant 0 : i32
    return %c0_i32, %c0_i32_0 : i32, i32
  }
  func.func @transform_4(%arg0: i32, %arg1: i32) -> (i32, i32) {
    %c0_i32 = arith.constant 0 : i32
    %c0_i32_0 = arith.constant 0 : i32
    %c0_i32_1 = arith.constant 0 : i32
    return %c0_i32, %c0_i32_0 : i32, i32
  }
  func.func @transform_5(%arg0: i32, %arg1: i32) -> (i32, i32, i32) {
    %c0_i32 = arith.constant 0 : i32
    %c0_i32_0 = arith.constant 0 : i32
    return %arg0, %arg1, %c0_i32 : i32, i32, i32
  }
}

</mosaic_0001>

<bundles_post_ra>
// kernel: _causal_conv_block.1
= control target key start
LH: loop header
LB: loop body
LE: loop exit
PB: predicated region body
PF: predicated region fallthrough
CT: control target
= control target key end

     0   :  { %10 = vsyncpa [#allocation4], 0  ;;  %s1045_s0 = inlined_call_operand.vmem [shape: f32[2,8,32], index: 0, kind: input, shape index: {}]   ;;  %s1046_s1 = inlined_call_operand.vmem [shape: f32[96,32], index: 1, kind: input, shape index: {}]   ;;  %s1047_s2 = inlined_call_operand.vmem [shape: f32[96,32], index: 2, kind: input, shape index: {}]   ;;  %s1048_s3 = inlined_call_operand.vmem [shape: f32[1,32], index: 3, kind: input, shape index: {}]   ;;  %s1049_s4 = inlined_call_operand.vmem [shape: f32[1,32], index: 4, kind: input, shape index: {}]   ;;  %s1050_s5 = inlined_call_operand.hbm [shape: f32[2,8,32], index: 5, kind: output, shape index: {}]  }
   0x1   :  { %12 = vsyncpa [#allocation4 + $0x1], 0  ;;  %s828_s18 = smov 0   ;;  %s830_s19 = smov 0  }
   0x2   :  { %s832_s20 = smov 0   ;;  %s834_s21 = smov 0  }
   0x3   :  { %s836_s22 = smov 0   ;;  %s838_s23 = smov 0  }
   0x4 LB: > { %s556_s24 = sadd.s32 4294967295, %s791_s23   ;;  %s557_s25 = sadd.s32 4294967294, %s791_s23   ;;  %s791_s23 = sphi %s838_s23, %s18_s23   ;;  %s787_s22 = sphi %s836_s22, %s1057_s22   ;;  %s783_s21 = sphi %s834_s21, %s1056_s21   ;;  %s779_s20 = sphi %s832_s20, %s1055_s20   ;;  %s775_s19 = sphi %s830_s19, %s1054_s19   ;;  %s771_s18 = sphi %s828_s18, %s1053_s18  }
   0x5   : > { %s30_s26 = sadd.s32 1, %s787_s22  ;;  %s151_s27 = sadd.s32 1, %s779_s20 }
   0x6   : > { %p32_p0 = scmp.ge.s32.totalorder %s30_s26, 2  ;;  %p161_p1 = scmp.ne.s32.totalorder %s779_s20, %s775_s19 }
   0x7   : > { %p162_p2 = scmp.eq.s32.totalorder %s556_s24, 1  ;;  %p167_p3 = scmp.ne.s32.totalorder %s775_s19, %s771_s18 }
   0x8   : > { %s1059_s26 = smov (%p32_p0, %s30_s26), 0  ;;  %p168_p5 = scmp.eq.s32.totalorder %s557_s25, 1 }
   0x9   : > { %p868_p4 = por %p162_p2, %p161_p1  ;;  %s146_s29 = ssub.s32 %s787_s22, %s1059_s26 }
   0xa   : > { %p560_p6 = scmp.ge.s32.totalorder %s791_s23, 1  ;;  %p149_p7 = scmp.eq.s32.totalorder %s146_s29, 0 }
   0xb   : > { %p875_p8 = por %p168_p5, %p167_p3  ;;  %p208_p9 = scmp.lt.s32.totalorder %s791_s23, 3 }
   0xc   : > { %s881_s6 = scalar_select %p149_p7, %s779_s20, %s151_s27  }
   0xd   : > { %p209_p10 = pnand %p560_p6, %p208_p9 }
   0xe   : > { %p238_p11 = scmp.lt.s32.totalorder (!%p209_p10), %s783_s21, 1  ;;  %s794_s10 = smov (!%p209_p10), 32  }
   0xf   : > { %212 = sbr.rel (%p209_p10) target bundleno = 397 (0x18d), region = 40  ;;  %s795_s25 = smov (!%p209_p10), 64  }
  0x10   : > { %s797_s16 = smov (!%p209_p10), [#allocation3]  }
  0x14   : > { %vm250_vm0 = vcmask 254976   ;;  %v793_v0 = vmov 0.0   ;;  %v288_v1 = vld [vmem:[%s1046_s1 + $0x58] sm:$0xff]  ;;  %v287_v3 = vld [vmem:[%s1046_s1 + $0x50] sm:$0xff]  ;;  %s239_s13 = scalar_select %p238_p11, %s783_s21, 1  ;;  %v286_v5 = vld [vmem:[%s1046_s1 + $0x48] sm:$0xff] }
  0x15   : > { %251 = vst.msk [vmem:[#allocation2] sm:$0x3] %vm250_vm0, %v793_v0  ;;  %598 = vmatprep.subr.mxu0 %v793_v0  ;;  %625 = vmatprep.subr.mxu1 %v793_v0  ;;  %v300_v2 = vld [vmem:[%s1047_s2 + $0x58] sm:$0xff]  ;;  %v299_v4 = vld [vmem:[%s1047_s2 + $0x50] sm:$0xff]  ;;  %v298_v6 = vld [vmem:[%s1047_s2 + $0x48] sm:$0xff]  ;;  %vm256_vm1 = vcmask 1041408  }
  0x16   : > { %599 = vmatpush3.msra.mxu0 %v288_v1  ;;  %626 = vmatpush3.msra.mxu1 %v300_v2  ;;  %s562_s27 = sshll.u32 %s239_s13, 3  ;;  %v285_v7 = vld [vmem:[%s1046_s1 + $0x40] sm:$0xff]  ;;  %vm468_vm2 = vcmask 261126   ;;  %v284_v11 = vld [vmem:[%s1046_s1 + $0x38] sm:$0xff]  ;;  %vm259_vm3 = vcmask 1046528   ;;  %v283_v16 = vld [vmem:[%s1046_s1 + $0x30] sm:$0xff] }
  0x17   : > { %600 = vmatprep.subr.mxu0 %v793_v0  ;;  %627 = vmatprep.subr.mxu1 %v793_v0  ;;  %s244_s8 = scalar_lea.vmem %s1045_s0, %s562_s27  ;;  %v297_v8 = vld [vmem:[%s1047_s2 + $0x40] sm:$0xff]  ;;  %v296_v12 = vld [vmem:[%s1047_s2 + $0x38] sm:$0xff]  ;;  %v295_v17 = vld [vmem:[%s1047_s2 + $0x30] sm:$0xff]  ;;  %vm266_vm4 = vcmask 1045504   ;;  %vm796_vm5 = vmmov 0   ;;  %vm273_vm6 = vcmask 261120  }
  0x18   : > { %601 = vmatpush3.msra.mxu0 %v287_v3  ;;  %628 = vmatpush3.msra.mxu1 %v299_v4  ;;  %v919_v9 = vld [vmem:[%s244_s8] sm:$0xff]  ;;  %v282_v21 = vld [vmem:[%s1046_s1 + $0x28] sm:$0xff]  ;;  %v280_v27 = vld [vmem:[%s1046_s1 + $0x18] sm:$0xff]  ;;  %vm275_vm7 = vcmask 523264   ;;  %vm308_vm8 = vcmask 785408   ;;  %s569_s8 = sshll.u32 %s783_s21, 7 }
  0x19   : > { %602 = vmatprep.subr.mxu0 %v793_v0  ;;  %629 = vmatprep.subr.mxu1 %v793_v0  ;;  %v254_v10 = vrot.slane %v919_v9, 6  ;;  %v294_v23 = vld [vmem:[%s1047_s2 + $0x28] sm:$0xff]  ;;  %v281_v24 = vld [vmem:[%s1046_s1 + $0x20] sm:$0xff]  ;;  %v292_v28 = vld [vmem:[%s1047_s2 + $0x18] sm:$0xff]  ;;  %s483_s13 = scalar_lea.hbm %s1050_s5, %s569_s8  ;;  %s719_s21 = sshll.u32 %s797_s16, 4  ;;  %s720_s21 = int_to_ptr.vmem [resolvable:$false] %s719_s21 }
  0x1a   : > { %603 = vmatpush3.msra.mxu0 %v286_v5  ;;  %630 = vmatpush3.msra.mxu1 %v298_v6  ;;  %v293_v26 = vld [vmem:[%s1047_s2 + $0x20] sm:$0xff]  ;;  %v279_v29 = vld [vmem:[%s1046_s1 + $0x10] sm:$0xff]  ;;  %v278_v31 = vld [vmem:[%s1046_s1 + $0x8] sm:$0xff]  ;;  %s721_s17 = scalar_lea.vmem %s720_s21, 256 }
  0x1b   : > { %604 = vmatprep.subr.mxu0 %v793_v0  ;;  %631 = vmatprep.subr.mxu1 %v793_v0  ;;  %v261_v15 = vrot.slane %v254_v10, 1  ;;  %v268_v20 = vrot.slane %v254_v10, 2  ;;  %v291_v30 = vld [vmem:[%s1047_s2 + $0x10] sm:$0xff]  ;;  %v290_v32 = vld [vmem:[%s1047_s2 + $0x8] sm:$0xff]  ;;  %v277_v33 = vld [vmem:[%s1046_s1] sm:$0xff] }
  0x1c   : > { %v252_v13 = vld [vmem:[#allocation2] sm:$0x3]  ;;  %605 = vmatpush3.msra.mxu0 %v285_v7  ;;  %632 = vmatpush3.msra.mxu1 %v297_v8 }
  0x1d   : > { %v930_v14 = vsel %vm256_vm1, %v252_v13, %v254_v10  ;;  %469 = vst.msk [vmem:[#allocation2 - $0x6] sm:$0xc0] %vm468_vm2, %v919_v9  ;;  %606 = vmatprep.subr.mxu0 %v793_v0  ;;  %633 = vmatprep.subr.mxu1 %v793_v0  ;;  %v289_v34 = vld [vmem:[%s1047_s2] sm:$0xff] }
  0x1e   : > { %v260_v18 = vrot.slane %v930_v14, 1  ;;  %v267_v19 = vrot.slane %v930_v14, 2  ;;  %607 = vmatpush3.msra.mxu0 %v284_v11  ;;  %634 = vmatpush3.msra.mxu1 %v296_v12  ;;  %v565_v39 = vld [vmem:[%s1049_s4] ss:$0 sm:$0xff] }
  0x1f   : > { %608 = vmatprep.subr.mxu0 %v793_v0  ;;  %635 = vmatprep.subr.mxu1 %v793_v0  ;;  %v563_v48 = vld [vmem:[%s1048_s3] ss:$0 sm:$0xff] }
  0x20   : > { %v262_v22 = vsel %vm259_vm3, %v260_v18, %v261_v15  ;;  %609 = vmatpush3.msra.mxu0 %v283_v16  ;;  %636 = vmatpush3.msra.mxu1 %v295_v17  ;;  %v269_v25 = vsel %vm266_vm4, %v267_v19, %v268_v20 }
  0x21   : > { %263 = vrot.lane.b32.xlu0 %v262_v22, %s794_s10  ;;  %610 = vmatprep.subr.mxu0 %v793_v0 }
  0x22   : > { %637 = vmatprep.subr.mxu1 %v793_v0  ;;  %611 = vmatpush3.msra.mxu0 %v282_v21 }
  0x23   : > { %638 = vmatpush3.msra.mxu1 %v294_v23  ;;  %612 = vmatprep.subr.mxu0 %v793_v0 }
  0x24   : > { %639 = vmatprep.subr.mxu1 %v793_v0  ;;  %613 = vmatpush3.msra.mxu0 %v281_v24 }
  0x25   : > { %270 = vrot.lane.b32.xlu0 %v269_v25, %s795_s25  ;;  %640 = vmatpush3.msra.mxu1 %v293_v26  ;;  %s235_s25 = sand.u32 1, %s775_s19  }
  0x26   : > { %614 = vmatprep.subr.mxu0 %v793_v0  ;;  %641 = vmatprep.subr.mxu1 %v793_v0  ;;  %s561_s27 = sshll.u32 %s235_s25, 3  ;;  %s471_s14 = scalar_lea.sflag [#allocation4], %s235_s25 }
  0x27   : > { %615 = vmatpush3.msra.mxu0 %v280_v27  ;;  %642 = vmatpush3.msra.mxu1 %v292_v28  ;;  %s237_s9 = scalar_lea.vmem [#allocation3], %s561_s27 }
  0x28   : > { %616 = vmatprep.subr.mxu0 %v793_v0  ;;  %643 = vmatprep.subr.mxu1 %v793_v0  ;;  %s485_s10 = sshll.u32 %s237_s9, 4  ;;  %s486_s10 = int_to_ptr.vmem [resolvable:$true] %s485_s10 }
  0x29   : > { %617 = vmatpush3.msra.mxu0 %v279_v29  ;;  %644 = vmatpush3.msra.mxu1 %v291_v30  ;;  %s715_s15 = scalar_lea.vmem %s486_s10, 128  ;;  %p722_p1 = scmp.lt.s32.totalorder %s486_s10, %s720_s21 }
  0x2a   : > { %618 = vmatprep.subr.mxu0 %v793_v0  ;;  %645 = vmatprep.subr.mxu1 %v793_v0  ;;  %p716_p12 = scmp.ne.s32.totalorder %s486_s10, %s715_s15  ;;  %p723_p2 = scmp.lt.s32.totalorder %s721_s17, %s715_s15 }
  0x2b   : > { %619 = vmatpush3.msra.mxu0 %v278_v31  ;;  %646 = vmatpush3.msra.mxu1 %v290_v32 }
  0x2c   : > { %620 = vmatprep.subr.mxu0 %v793_v0  ;;  %647 = vmatprep.subr.mxu1 %v793_v0  ;;  %p717_p13 = pnand %p716_p12, %p868_p4  ;;  %p724_p3 = por %p723_p2, %p722_p1 }
  0x2d   : > { %621 = vmatpush3.msra.mxu0 %v277_v33  ;;  %622 = vmatprep.mubr.msk.f32.mxu0 %vm796_vm5, %v793_v0 }
  0x2e   : > { %648 = vmatpush3.msra.mxu1 %v289_v34  ;;  %649 = vmatprep.mubr.msk.f32.mxu1 %vm796_vm5, %v793_v0  ;;  %p718_p0 = pneg %p717_p13 }
  0x30   : > { %p725_p5 = pnand %p724_p3, %p718_p0 }
  0x93   : > { %v264_v35 = vpop.permute.xlu0 %263 }
  0x94   : > { %v274_v36 = vsel %vm273_vm6, %v930_v14, %v264_v35 }
  0x97   : > { %v271_v37 = vpop.permute.xlu0 %270 }
  0x98   : > { %v276_v38 = vsel %vm275_vm7, %v274_v36, %v271_v37 }
  0x99   : > { %623 = vmatmul.mubr.msk.f32.vlgmr.msra.gmra.mxu0 %vm308_vm8, %v276_v38  ;;  %650 = vmatmul.mubr.msk.f32.vlgmr.msra.gmra.mxu1 %vm308_vm8, %v276_v38 }
 0x159   : > { %v378_v40 = vpop.f32.mrf.mxu0  ;;  %v455_v41 = vpop.f32.mrf.mxu1 }
 0x15a   : > { %v456_v42 = vadd.f32 %v565_v39, %v455_v41  ;;  %v379_v49 = vadd.f32 %v563_v48, %v378_v40 }
 0x15b   : > { %v624_v43 = vpop.f32.mrf.mxu0  ;;  %v651_v44 = vpop.f32.mrf.mxu1 }
 0x15c   : > { %v567_v45 = vmul.f32 -1.442695, %v456_v42 }
 0x15e   : > { %711 = vpow2.f32 %v567_v45 }
 0x16b   : > { %v712_v46 = vpop.eup %711 }
 0x16c   : > { %v462_v47 = vadd.f32 1.0, %v712_v46 }
 0x16e   : > { %713 = vrcp.f32 %v462_v47 }
 0x17b   : > { %v714_v50 = vpop.eup %713 }
 0x17c   : > { %v465_v51 = vmul.f32 %v714_v50, %v379_v49 }
 0x17e   : > { %v466_v52 = vadd.f32 %v465_v51, %v919_v9 }
 0x180   : > { %467 = vst.msk [vmem:[%s237_s9] sm:$0xff] %vm273_vm6, %v466_v52 }
 0x181   : > { %728 = shalt.err (!%p725_p5)
}
 0x182   : > { %s729_s24 = scalar_lea.hbm %s483_s13, 128  ;;  %s733_s29 = scalar_lea.hbm %s1050_s5, 256 }
 0x183   : > { %p730_p6 = scmp.ne.s32.totalorder %s483_s13, %s729_s24  ;;  %p734_p10 = scmp.lt.s32.totalorder %s483_s13, %s1050_s5 }
 0x184   : > { %p735_p11 = scmp.lt.s32.totalorder %s733_s29, %s729_s24 }
 0x185   : > { %p731_p7 = pnand %p730_p6, %p868_p4 }
 0x186   : > { %p736_p12 = por %p735_p11, %p734_p10 }
 0x187   : > { %p732_p9 = pneg %p731_p7 }
 0x189   : > { %p737_p13 = pnand %p736_p12, %p732_p9 }
 0x18b   : > { %740 = shalt.err (!%p737_p13)
}
 0x18c   : > { %652 = dma.vmem_to_hbm [thread:$0]  (%p868_p4), %s486_s10, 128, %s483_s13, %s471_s14  }
 0x18d PF: > { %p658_p0 = scmp.ge.s32.totalorder %s791_s23, 2  ;;  %s497_s9 = sand.u32 1, %s771_s18  }
 0x18e   : > { %s498_s11 = scalar_lea.sflag [#allocation4], %s497_s9 }
 0x18f   : > { %p655_p1 = pnand %p658_p0, %p875_p8 }
 0x191   : > { %p656_p2 = pneg %p655_p1 }
 0x193   : > { %766 = dma.done.wait (%p656_p2), %s498_s11, 128  }
 0x194   : > { %768 = vsyncadd (%p656_p2), %s498_s11, 4294967168  ;;  %s18_s23 = sadd.s32 1, %s791_s23   ;;  %s1053_s18 = smov %s775_s19 }
 0x195   : > { %p15_p3 = scmp.ge.s32.totalorder %s18_s23, 4   ;;  %s1054_s19 = smov %s779_s20 }
 0x196   : > { %s1055_s20 = smov %s881_s6  ;;  %s1056_s21 = smov %s787_s22 }
 0x197   : > { %s1057_s22 = smov %s1059_s26  ;;  %17 = sbr.rel (!%p15_p3) target bundleno = 4 (0x4), region = 79 }
 0x19c   :  { %503 = vsyncpa [#allocation4], 1 }
 0x19d   :  { %505 = vsyncpa [#allocation4 + $0x1], 1 }

// kernel: _causal_conv_block.1
= control target key start
LH: loop header
LB: loop body
LE: loop exit
PB: predicated region body
PF: predicated region fallthrough
CT: control target
= control target key end

     0   :  { %10 = vsyncpa [#allocation4], 0  ;;  %s1045_s0 = inlined_call_operand.vmem [shape: f32[2,8,32], index: 0, kind: input, shape index: {}]   ;;  %s1046_s1 = inlined_call_operand.vmem [shape: f32[96,32], index: 1, kind: input, shape index: {}]   ;;  %s1047_s2 = inlined_call_operand.vmem [shape: f32[96,32], index: 2, kind: input, shape index: {}]   ;;  %s1048_s3 = inlined_call_operand.vmem [shape: f32[1,32], index: 3, kind: input, shape index: {}]   ;;  %s1049_s4 = inlined_call_operand.vmem [shape: f32[1,32], index: 4, kind: input, shape index: {}]   ;;  %s1050_s5 = inlined_call_operand.hbm [shape: f32[2,8,32], index: 5, kind: output, shape index: {}]  }
   0x1   :  { %12 = vsyncpa [#allocation4 + $0x1], 0  ;;  %s828_s18 = smov 0   ;;  %s830_s19 = smov 0  }
   0x2   :  { %s832_s20 = smov 0   ;;  %s834_s21 = smov 0  }
   0x3   :  { %s836_s22 = smov 0   ;;  %s838_s23 = smov 0  }
   0x4 LB: > { %s556_s24 = sadd.s32 4294967295, %s791_s23   ;;  %s557_s25 = sadd.s32 4294967294, %s791_s23   ;;  %s791_s23 = sphi %s838_s23, %s18_s23   ;;  %s787_s22 = sphi %s836_s22, %s1057_s22   ;;  %s783_s21 = sphi %s834_s21, %s1056_s21   ;;  %s779_s20 = sphi %s832_s20, %s1055_s20   ;;  %s775_s19 = sphi %s830_s19, %s1054_s19   ;;  %s771_s18 = sphi %s828_s18, %s1053_s18  }
   0x5   : > { %s30_s26 = sadd.s32 1, %s787_s22  ;;  %s151_s27 = sadd.s32 1, %s779_s20 }
   0x6   : > { %p32_p0 = scmp.ge.s32.totalorder %s30_s26, 2  ;;  %p161_p1 = scmp.ne.s32.totalorder %s779_s20, %s775_s19 }
   0x7   : > { %p162_p2 = scmp.eq.s32.totalorder %s556_s24, 1  ;;  %p167_p3 = scmp.ne.s32.totalorder %s775_s19, %s771_s18 }
   0x8   : > { %s1059_s26 = smov (%p32_p0, %s30_s26), 0  ;;  %p168_p5 = scmp.eq.s32.totalorder %s557_s25, 1 }
   0x9   : > { %p868_p4 = por %p162_p2, %p161_p1  ;;  %s146_s29 = ssub.s32 %s787_s22, %s1059_s26 }
   0xa   : > { %p560_p6 = scmp.ge.s32.totalorder %s791_s23, 1  ;;  %p149_p7 = scmp.eq.s32.totalorder %s146_s29, 0 }
   0xb   : > { %p875_p8 = por %p168_p5, %p167_p3  ;;  %p208_p9 = scmp.lt.s32.totalorder %s791_s23, 3 }
   0xc   : > { %s881_s6 = scalar_select %p149_p7, %s779_s20, %s151_s27  }
   0xd   : > { %p209_p10 = pnand %p560_p6, %p208_p9 }
   0xe   : > { %p238_p11 = scmp.lt.s32.totalorder (!%p209_p10), %s783_s21, 1  ;;  %s794_s10 = smov (!%p209_p10), 32  }
   0xf   : > { %212 = sbr.rel (%p209_p10) target bundleno = 397 (0x18d), region = 40  ;;  %s795_s25 = smov (!%p209_p10), 64  }
  0x10   : > { %s797_s16 = smov (!%p209_p10), [#allocation3]  }
  0x14   : > { %vm250_vm0 = vcmask 254976   ;;  %v793_v0 = vmov 0.0   ;;  %v288_v1 = vld [vmem:[%s1046_s1 + $0x58] sm:$0xff]  ;;  %v287_v3 = vld [vmem:[%s1046_s1 + $0x50] sm:$0xff]  ;;  %s239_s13 = scalar_select %p238_p11, %s783_s21, 1  ;;  %v286_v5 = vld [vmem:[%s1046_s1 + $0x48] sm:$0xff] }
  0x15   : > { %251 = vst.msk [vmem:[#allocation2] sm:$0x3] %vm250_vm0, %v793_v0  ;;  %598 = vmatprep.subr.mxu0 %v793_v0  ;;  %625 = vmatprep.subr.mxu1 %v793_v0  ;;  %v300_v2 = vld [vmem:[%s1047_s2 + $0x58] sm:$0xff]  ;;  %v299_v4 = vld [vmem:[%s1047_s2 + $0x50] sm:$0xff]  ;;  %v298_v6 = vld [vmem:[%s1047_s2 + $0x48] sm:$0xff]  ;;  %vm256_vm1 = vcmask 1041408  }
  0x16   : > { %599 = vmatpush3.msra.mxu0 %v288_v1  ;;  %626 = vmatpush3.msra.mxu1 %v300_v2  ;;  %s562_s27 = sshll.u32 %s239_s13, 3  ;;  %v285_v7 = vld [vmem:[%s1046_s1 + $0x40] sm:$0xff]  ;;  %vm468_vm2 = vcmask 261126   ;;  %v284_v11 = vld [vmem:[%s1046_s1 + $0x38] sm:$0xff]  ;;  %vm259_vm3 = vcmask 1046528   ;;  %v283_v16 = vld [vmem:[%s1046_s1 + $0x30] sm:$0xff] }
  0x17   : > { %600 = vmatprep.subr.mxu0 %v793_v0  ;;  %627 = vmatprep.subr.mxu1 %v793_v0  ;;  %s244_s8 = scalar_lea.vmem %s1045_s0, %s562_s27  ;;  %v297_v8 = vld [vmem:[%s1047_s2 + $0x40] sm:$0xff]  ;;  %v296_v12 = vld [vmem:[%s1047_s2 + $0x38] sm:$0xff]  ;;  %v295_v17 = vld [vmem:[%s1047_s2 + $0x30] sm:$0xff]  ;;  %vm266_vm4 = vcmask 1045504   ;;  %vm796_vm5 = vmmov 0   ;;  %vm273_vm6 = vcmask 261120  }
  0x18   : > { %601 = vmatpush3.msra.mxu0 %v287_v3  ;;  %628 = vmatpush3.msra.mxu1 %v299_v4  ;;  %v919_v9 = vld [vmem:[%s244_s8] sm:$0xff]  ;;  %v282_v21 = vld [vmem:[%s1046_s1 + $0x28] sm:$0xff]  ;;  %v280_v27 = vld [vmem:[%s1046_s1 + $0x18] sm:$0xff]  ;;  %vm275_vm7 = vcmask 523264   ;;  %vm308_vm8 = vcmask 785408   ;;  %s569_s8 = sshll.u32 %s783_s21, 7 }
  0x19   : > { %602 = vmatprep.subr.mxu0 %v793_v0  ;;  %629 = vmatprep.subr.mxu1 %v793_v0  ;;  %v254_v10 = vrot.slane %v919_v9, 6  ;;  %v294_v23 = vld [vmem:[%s1047_s2 + $0x28] sm:$0xff]  ;;  %v281_v24 = vld [vmem:[%s1046_s1 + $0x20] sm:$0xff]  ;;  %v292_v28 = vld [vmem:[%s1047_s2 + $0x18] sm:$0xff]  ;;  %s483_s13 = scalar_lea.hbm %s1050_s5, %s569_s8  ;;  %s719_s21 = sshll.u32 %s797_s16, 4  ;;  %s720_s21 = int_to_ptr.vmem [resolvable:$false] %s719_s21 }
  0x1a   : > { %603 = vmatpush3.msra.mxu0 %v286_v5  ;;  %630 = vmatpush3.msra.mxu1 %v298_v6  ;;  %v293_v26 = vld [vmem:[%s1047_s2 + $0x20] sm:$0xff]  ;;  %v279_v29 = vld [vmem:[%s1046_s1 + $0x10] sm:$0xff]  ;;  %v278_v31 = vld [vmem:[%s1046_s1 + $0x8] sm:$0xff]  ;;  %s721_s17 = scalar_lea.vmem %s720_s21, 256 }
  0x1b   : > { %604 = vmatprep.subr.mxu0 %v793_v0  ;;  %631 = vmatprep.subr.mxu1 %v793_v0  ;;  %v261_v15 = vrot.slane %v254_v10, 1  ;;  %v268_v20 = vrot.slane %v254_v10, 2  ;;  %v291_v30 = vld [vmem:[%s1047_s2 + $0x10] sm:$0xff]  ;;  %v290_v32 = vld [vmem:[%s1047_s2 + $0x8] sm:$0xff]  ;;  %v277_v33 = vld [vmem:[%s1046_s1] sm:$0xff] }
  0x1c   : > { %v252_v13 = vld [vmem:[#allocation2] sm:$0x3]  ;;  %605 = vmatpush3.msra.mxu0 %v285_v7  ;;  %632 = vmatpush3.msra.mxu1 %v297_v8 }
  0x1d   : > { %v930_v14 = vsel %vm256_vm1, %v252_v13, %v254_v10  ;;  %469 = vst.msk [vmem:[#allocation2 - $0x6] sm:$0xc0] %vm468_vm2, %v919_v9  ;;  %606 = vmatprep.subr.mxu0 %v793_v0  ;;  %633 = vmatprep.subr.mxu1 %v793_v0  ;;  %v289_v34 = vld [vmem:[%s1047_s2] sm:$0xff] }
  0x1e   : > { %v260_v18 = vrot.slane %v930_v14, 1  ;;  %v267_v19 = vrot.slane %v930_v14, 2  ;;  %607 = vmatpush3.msra.mxu0 %v284_v11  ;;  %634 = vmatpush3.msra.mxu1 %v296_v12  ;;  %v565_v39 = vld [vmem:[%s1049_s4] ss:$0 sm:$0xff] }
  0x1f   : > { %608 = vmatprep.subr.mxu0 %v793_v0  ;;  %635 = vmatprep.subr.mxu1 %v793_v0  ;;  %v563_v48 = vld [vmem:[%s1048_s3] ss:$0 sm:$0xff] }
  0x20   : > { %v262_v22 = vsel %vm259_vm3, %v260_v18, %v261_v15  ;;  %609 = vmatpush3.msra.mxu0 %v283_v16  ;;  %636 = vmatpush3.msra.mxu1 %v295_v17  ;;  %v269_v25 = vsel %vm266_vm4, %v267_v19, %v268_v20 }
  0x21   : > { %263 = vrot.lane.b32.xlu0 %v262_v22, %s794_s10  ;;  %610 = vmatprep.subr.mxu0 %v793_v0 }
  0x22   : > { %637 = vmatprep.subr.mxu1 %v793_v0  ;;  %611 = vmatpush3.msra.mxu0 %v282_v21 }
  0x23   : > { %638 = vmatpush3.msra.mxu1 %v294_v23  ;;  %612 = vmatprep.subr.mxu0 %v793_v0 }
  0x24   : > { %639 = vmatprep.subr.mxu1 %v793_v0  ;;  %613 = vmatpush3.msra.mxu0 %v281_v24 }
  0x25   : > { %270 = vrot.lane.b32.xlu0 %v269_v25, %s795_s25  ;;  %640 = vmatpush3.msra.mxu1 %v293_v26  ;;  %s235_s25 = sand.u32 1, %s775_s19  }
  0x26   : > { %614 = vmatprep.subr.mxu0 %v793_v0  ;;  %641 = vmatprep.subr.mxu1 %v793_v0  ;;  %s561_s27 = sshll.u32 %s235_s25, 3  ;;  %s471_s14 = scalar_lea.sflag [#allocation4], %s235_s25 }
  0x27   : > { %615 = vmatpush3.msra.mxu0 %v280_v27  ;;  %642 = vmatpush3.msra.mxu1 %v292_v28  ;;  %s237_s9 = scalar_lea.vmem [#allocation3], %s561_s27 }
  0x28   : > { %616 = vmatprep.subr.mxu0 %v793_v0  ;;  %643 = vmatprep.subr.mxu1 %v793_v0  ;;  %s485_s10 = sshll.u32 %s237_s9, 4  ;;  %s486_s10 = int_to_ptr.vmem [resolvable:$true] %s485_s10 }
  0x29   : > { %617 = vmatpush3.msra.mxu0 %v279_v29  ;;  %644 = vmatpush3.msra.mxu1 %v291_v30  ;;  %s715_s15 = scalar_lea.vmem %s486_s10, 128  ;;  %p722_p1 = scmp.lt.s32.totalorder %s486_s10, %s720_s21 }
  0x2a   : > { %618 = vmatprep.subr.mxu0 %v793_v0  ;;  %645 = vmatprep.subr.mxu1 %v793_v0  ;;  %p716_p12 = scmp.ne.s32.totalorder %s486_s10, %s715_s15  ;;  %p723_p2 = scmp.lt.s32.totalorder %s721_s17, %s715_s15 }
  0x2b   : > { %619 = vmatpush3.msra.mxu0 %v278_v31  ;;  %646 = vmatpush3.msra.mxu1 %v290_v32 }
  0x2c   : > { %620 = vmatprep.subr.mxu0 %v793_v0  ;;  %647 = vmatprep.subr.mxu1 %v793_v0  ;;  %p717_p13 = pnand %p716_p12, %p868_p4  ;;  %p724_p3 = por %p723_p2, %p722_p1 }
  0x2d   : > { %621 = vmatpush3.msra.mxu0 %v277_v33  ;;  %622 = vmatprep.mubr.msk.f32.mxu0 %vm796_vm5, %v793_v0 }
  0x2e   : > { %648 = vmatpush3.msra.mxu1 %v289_v34  ;;  %649 = vmatprep.mubr.msk.f32.mxu1 %vm796_vm5, %v793_v0  ;;  %p718_p0 = pneg %p717_p13 }
  0x30   : > { %p725_p5 = pnand %p724_p3, %p718_p0 }
  0x93   : > { %v264_v35 = vpop.permute.xlu0 %263 }
  0x94   : > { %v274_v36 = vsel %vm273_vm6, %v930_v14, %v264_v35 }
  0x97   : > { %v271_v37 = vpop.permute.xlu0 %270 }
  0x98   : > { %v276_v38 = vsel %vm275_vm7, %v274_v36, %v271_v37 }
  0x99   : > { %623 = vmatmul.mubr.msk.f32.vlgmr.msra.gmra.mxu0 %vm308_vm8, %v276_v38  ;;  %650 = vmatmul.mubr.msk.f32.vlgmr.msra.gmra.mxu1 %vm308_vm8, %v276_v38 }
 0x159   : > { %v378_v40 = vpop.f32.mrf.mxu0  ;;  %v455_v41 = vpop.f32.mrf.mxu1 }
 0x15a   : > { %v456_v42 = vadd.f32 %v565_v39, %v455_v41  ;;  %v379_v49 = vadd.f32 %v563_v48, %v378_v40 }
 0x15b   : > { %v624_v43 = vpop.f32.mrf.mxu0  ;;  %v651_v44 = vpop.f32.mrf.mxu1 }
 0x15c   : > { %v567_v45 = vmul.f32 -1.442695, %v456_v42 }
 0x15e   : > { %711 = vpow2.f32 %v567_v45 }
 0x16b   : > { %v712_v46 = vpop.eup %711 }
 0x16c   : > { %v462_v47 = vadd.f32 1.0, %v712_v46 }
 0x16e   : > { %713 = vrcp.f32 %v462_v47 }
 0x17b   : > { %v714_v50 = vpop.eup %713 }
 0x17c   : > { %v465_v51 = vmul.f32 %v714_v50, %v379_v49 }
 0x17e   : > { %v466_v52 = vadd.f32 %v465_v51, %v919_v9 }
 0x180   : > { %467 = vst.msk [vmem:[%s237_s9] sm:$0xff] %vm273_vm6, %v466_v52 }
 0x181   : > { %728 = shalt.err (!%p725_p5)
}
 0x182   : > { %s729_s24 = scalar_lea.hbm %s483_s13, 128  ;;  %s733_s29 = scalar_lea.hbm %s1050_s5, 256 }
 0x183   : > { %p730_p6 = scmp.ne.s32.totalorder %s483_s13, %s729_s24  ;;  %p734_p10 = scmp.lt.s32.totalorder %s483_s13, %s1050_s5 }
 0x184   : > { %p735_p11 = scmp.lt.s32.totalorder %s733_s29, %s729_s24 }
 0x185   : > { %p731_p7 = pnand %p730_p6, %p868_p4 }
 0x186   : > { %p736_p12 = por %p735_p11, %p734_p10 }
 0x187   : > { %p732_p9 = pneg %p731_p7 }
 0x189   : > { %p737_p13 = pnand %p736_p12, %p732_p9 }
 0x18b   : > { %740 = shalt.err (!%p737_p13)
}
 0x18c   : > { %652 = dma.vmem_to_hbm [thread:$0]  (%p868_p4), %s486_s10, 128, %s483_s13, %s471_s14  }
 0x18d PF: > { %p658_p0 = scmp.ge.s32.totalorder %s791_s23, 2  ;;  %s497_s9 = sand.u32 1, %s771_s18  }
 0x18e   : > { %s498_s11 = scalar_lea.sflag [#allocation4], %s497_s9 }
 0x18f   : > { %p655_p1 = pnand %p658_p0, %p875_p8 }
 0x191   : > { %p656_p2 = pneg %p655_p1 }
 0x193   : > { %766 = dma.done.wait (%p656_p2), %s498_s11, 128  }
 0x194   : > { %768 = vsyncadd (%p656_p2), %s498_s11, 4294967168  ;;  %s18_s23 = sadd.s32 1, %s791_s23   ;;  %s1053_s18 = smov %s775_s19 }
 0x195   : > { %p15_p3 = scmp.ge.s32.totalorder %s18_s23, 4   ;;  %s1054_s19 = smov %s779_s20 }
 0x196   : > { %s1055_s20 = smov %s881_s6  ;;  %s1056_s21 = smov %s787_s22 }
 0x197   : > { %s1057_s22 = smov %s1059_s26  ;;  %17 = sbr.rel (!%p15_p3) target bundleno = 4 (0x4), region = 79 }
 0x19c   :  { %503 = vsyncpa [#allocation4], 1 }
 0x19d   :  { %505 = vsyncpa [#allocation4 + $0x1], 1 }

</bundles_post_ra>
